<compile_context>
chip_gen: v6e
topology: v6e:2x2x1
jax: 0.10.0
libtpu: 0.0.40
codegen_flags: <defaults>
</compile_context>

<pallas_src>
import functools

import jax
import jax.numpy as jnp
from jax.experimental import pallas as pl
from jax.experimental.pallas import tpu as pltpu


def _round_up(x, m):
    return ((x + m - 1) // m) * m


def _softplus(z):
    # Numerically stable softplus; matches jnp.logaddexp(z, 0) and (within float
    # tolerance) torch.nn.functional.softplus.
    return jnp.maximum(z, 0.0) + jnp.log1p(jnp.exp(-jnp.abs(z)))


def critic_kernel(x_ref,
                  w1_ref, b1_ref,
                  w2_ref, b2_ref,
                  w3_ref, b3_ref,
                  w4_ref, b4_ref,
                  out_ref):
    # x: [input_size, tb]  (features on sublanes, batch on lanes)
    x = x_ref[...]
    # W @ X + b  — weights are torch-layout [out, in], biases [out, 1] broadcast
    # across the (lane-dense) batch axis.
    h = _softplus(jnp.dot(w1_ref[...], x, preferred_element_type=jnp.float32)
                  + b1_ref[...])
    h = _softplus(jnp.dot(w2_ref[...], h, preferred_element_type=jnp.float32)
                  + b2_ref[...])
    h = _softplus(jnp.dot(w3_ref[...], h, preferred_element_type=jnp.float32)
                  + b3_ref[...])
    y = jnp.dot(w4_ref[...], h, preferred_element_type=jnp.float32) + b4_ref[...]
    out_ref[...] = y.astype(out_ref.dtype)  # (out_size, tb) — lane-dense store


@functools.partial(jax.jit, static_argnames=("block_batch",))
def critic_forward(state, action, params, *, block_batch=4096):
    """Critic forward pass.

    params: torch-style dict — w{i} of shape [out, in], b{i} of shape [out].
    Returns [batch, output_size].
    """
    batch, state_dim = state.shape
    action_dim = action.shape[1]
    input_size = state_dim + action_dim
    nn_size = params["w2"].shape[0]
    out_size = params["w4"].shape[0]

    # Build the transposed input slab once in the wrapper: [input_size, batch].
    # This replaces both the in-kernel concat and the split-K layer-1 trick.
    x_t = jnp.concatenate([state, action], axis=1).T

    # Biases as column vectors so they broadcast over the lane (batch) axis.
    b1 = params["b1"].reshape(-1, 1)
    b2 = params["b2"].reshape(-1, 1)
    b3 = params["b3"].reshape(-1, 1)
    b4 = params["b4"].reshape(-1, 1)

    # Batch tiling: 256-aligned (multiple of 128 for v5e lanes and of the 256-wide
    # MXU N-dim on v6e/v7x).  Cap at ~half the padded batch once >=2 tiles exist so
    # the "parallel" grid axis actually gives both v7x TensorCores work.
    LANE_TILE = 256
    padded_min = _round_up(batch, LANE_TILE)
    tb = min(block_batch, padded_min)
    if padded_min >= 2 * LANE_TILE:
        tb = min(tb, _round_up(padded_min // 2, LANE_TILE))
    padded = _round_up(batch, tb)
    if padded != batch:
        x_t = jnp.pad(x_t, ((0, 0), (0, padded - batch)))

    grid = (padded // tb,)

    def batch_spec(rows):
        return pl.BlockSpec((rows, tb), lambda i: (0, i))

    def const_spec(shape):
        return pl.BlockSpec(shape, lambda i: (0, 0))

    args = (x_t,
            params["w1"], b1,
            params["w2"], b2,
            params["w3"], b3,
            params["w4"], b4)

    in_specs = [
        batch_spec(input_size),                                # x slab
        const_spec(params["w1"].shape), const_spec(b1.shape),
        const_spec(params["w2"].shape), const_spec(b2.shape),
        const_spec(params["w3"].shape), const_spec(b3.shape),
        const_spec(params["w4"].shape), const_spec(b4.shape),
    ]

    # Advisory cost for the XLA scheduler.
    flops = 2 * padded * (input_size * nn_size
                          + 2 * nn_size * nn_size
                          + nn_size * out_size)
    transcendentals = 2 * 3 * padded * nn_size  # exp + log1p per softplus element
    weight_bytes = sum(int(w.size) * 4 for w in (params["w1"], b1,
                                                 params["w2"], b2,
                                                 params["w3"], b3,
                                                 params["w4"], b4))
    bytes_accessed = padded * (input_size + out_size) * 4 + weight_bytes

    out_t = pl.pallas_call(
        critic_kernel,
        out_shape=jax.ShapeDtypeStruct((out_size, padded), jnp.float32),
        grid=grid,
        in_specs=in_specs,
        out_specs=pl.BlockSpec((out_size, tb), lambda i: (0, i)),
        compiler_params=pltpu.CompilerParams(
            dimension_semantics=("parallel",),
            vmem_limit_bytes=32 * 1024 * 1024,
        ),
        cost_estimate=pl.CostEstimate(
            flops=flops,
            transcendentals=transcendentals,
            bytes_accessed=bytes_accessed,
        ),
    )(*args)

    # [out_size, padded] -> [batch, out_size]
    return out_t[:, :batch].T


def init_params(key, input_size, nn_size, output_size):
    """Deterministic torch.nn.Linear-style init (uniform +/- 1/sqrt(fan_in)).

    Weights are stored exactly like torch: w{i} is [out, in], b{i} is [out].
    """
    sizes = [(input_size, nn_size), (nn_size, nn_size),
             (nn_size, nn_size), (nn_size, output_size)]
    params = {}
    for i, (fan_in, fan_out) in enumerate(sizes, start=1):
        key, kw, kb = jax.random.split(key, 3)
        bound = 1.0 / (fan_in ** 0.5)
        params[f"w{i}"] = jax.random.uniform(
            kw, (fan_out, fan_in), jnp.float32, -bound, bound)
        params[f"b{i}"] = jax.random.uniform(
            kb, (fan_out,), jnp.float32, -bound, bound)
    return params


def critic_reference(state, action, params):
    """Pure-JAX reference (mirrors the PyTorch module) for correctness checking."""
    x = jnp.concatenate([state, action], axis=1)
    sp = lambda z: jnp.logaddexp(z, 0.0)
    x = sp(x @ params["w1"].T + params["b1"])
    x = sp(x @ params["w2"].T + params["b2"])
    x = sp(x @ params["w3"].T + params["b3"])
    return x @ params["w4"].T + params["b4"]


if __name__ == "__main__":
    # Small shapes consistent with the module: state_dim + action_dim = inputSize.
    batch, state_dim, action_dim = 8, 24, 8
    input_size = state_dim + action_dim   # 32
    nn_size = 32
    output_size = 1

    key = jax.random.PRNGKey(0)
    k_s, k_a, k_p = jax.random.split(key, 3)
    state = jax.random.normal(k_s, (batch, state_dim), jnp.float32)
    action = jax.random.normal(k_a, (batch, action_dim), jnp.float32)
    params = init_params(k_p, input_size, nn_size, output_size)

    out = jax.block_until_ready(critic_forward(state, action, params))
    ref = critic_reference(state, action, params)
    assert out.shape == (batch, output_size)
    assert jnp.allclose(out, ref, atol=1e-4, rtol=1e-4)

    # Batch that is not tile-aligned and large enough to produce a >=2-step grid
    # (exercises both the padded-tail path and the multi-tile / megacore path).
    batch2 = 300
    k_s2, k_a2 = jax.random.split(jax.random.PRNGKey(1))
    state2 = jax.random.normal(k_s2, (batch2, state_dim), jnp.float32)
    action2 = jax.random.normal(k_a2, (batch2, action_dim), jnp.float32)
    out2 = jax.block_until_ready(critic_forward(state2, action2, params))
    ref2 = critic_reference(state2, action2, params)
    assert out2.shape == (batch2, output_size)
    assert jnp.allclose(out2, ref2, atol=1e-4, rtol=1e-4)

    print("KERNEL_OK")
</pallas_src>

<mosaic_0001>
module attributes {stable_mosaic.version = 11 : i64} {
  func.func @critic_kernel(%arg0: i32, %arg1: memref<32x256xf32, #tpu.memory_space<vmem>>, %arg2: memref<32x32xf32, #tpu.memory_space<vmem>>, %arg3: memref<32x1xf32, #tpu.memory_space<vmem>>, %arg4: memref<32x32xf32, #tpu.memory_space<vmem>>, %arg5: memref<32x1xf32, #tpu.memory_space<vmem>>, %arg6: memref<32x32xf32, #tpu.memory_space<vmem>>, %arg7: memref<32x1xf32, #tpu.memory_space<vmem>>, %arg8: memref<1x32xf32, #tpu.memory_space<vmem>>, %arg9: memref<1x1xf32, #tpu.memory_space<vmem>>, %arg10: memref<1x256xf32, #tpu.memory_space<vmem>>) attributes {dimension_semantics = [#tpu.dimension_semantics<parallel>], iteration_bounds = array<i64: 1>, scalar_prefetch = 0 : i64, scratch_operands = 0 : i64, tpu.core_type = #tpu.core_type<tc>, window_params = [{transform_indices = @transform_0, window_bounds = array<i64: 32, 256>}, {pipeline_mode = #tpu.pipeline_mode<synchronous>, transform_indices = @transform_1, window_bounds = array<i64: 32, 32>}, {pipeline_mode = #tpu.pipeline_mode<synchronous>, transform_indices = @transform_2, window_bounds = array<i64: 32, 1>}, {pipeline_mode = #tpu.pipeline_mode<synchronous>, transform_indices = @transform_3, window_bounds = array<i64: 32, 32>}, {pipeline_mode = #tpu.pipeline_mode<synchronous>, transform_indices = @transform_4, window_bounds = array<i64: 32, 1>}, {pipeline_mode = #tpu.pipeline_mode<synchronous>, transform_indices = @transform_5, window_bounds = array<i64: 32, 32>}, {pipeline_mode = #tpu.pipeline_mode<synchronous>, transform_indices = @transform_6, window_bounds = array<i64: 32, 1>}, {pipeline_mode = #tpu.pipeline_mode<synchronous>, transform_indices = @transform_7, window_bounds = array<i64: 1, 32>}, {pipeline_mode = #tpu.pipeline_mode<synchronous>, transform_indices = @transform_8, window_bounds = array<i64: 1, 1>}, {transform_indices = @transform_9, window_bounds = array<i64: 1, 256>}]} {
    %c0 = arith.constant 0 : index
    %c0_0 = arith.constant 0 : index
    %0 = vector.load %arg1[%c0, %c0_0] : memref<32x256xf32, #tpu.memory_space<vmem>>, vector<32x256xf32>
    %c0_1 = arith.constant 0 : index
    %c0_2 = arith.constant 0 : index
    %1 = vector.load %arg2[%c0_1, %c0_2] : memref<32x32xf32, #tpu.memory_space<vmem>>, vector<32x32xf32>
    %cst = arith.constant dense<0.000000e+00> : vector<32x256xf32>
    %2 = tpu.matmul %1, %0, %cst {dimension_numbers = #tpu.dot_dimension_numbers<[1], [0], [0], [1], [0, 0, 1, 1], [], []>} : vector<32x32xf32>, vector<32x256xf32>, vector<32x256xf32> -> vector<32x256xf32>
    %c0_3 = arith.constant 0 : index
    %c0_4 = arith.constant 0 : index
    %3 = vector.load %arg3[%c0_3, %c0_4] : memref<32x1xf32, #tpu.memory_space<vmem>>, vector<32x1xf32>
    %4 = vector.broadcast %3 : vector<32x1xf32> to vector<32x256xf32>
    %5 = arith.addf %2, %4 : vector<32x256xf32>
    %cst_5 = arith.constant 0.000000e+00 : f32
    %6 = vector.broadcast %cst_5 : f32 to vector<32x256xf32>
    %7 = arith.maximumf %5, %6 : vector<32x256xf32>
    %8 = math.absf %5 : vector<32x256xf32>
    %cst_6 = arith.constant 0.000000e+00 : f32
    %9 = vector.broadcast %cst_6 : f32 to vector<32x256xf32>
    %10 = arith.subf %9, %8 : vector<32x256xf32>
    %11 = math.exp %10 : vector<32x256xf32>
    %12 = math.log1p %11 : vector<32x256xf32>
    %13 = arith.addf %7, %12 : vector<32x256xf32>
    %c0_7 = arith.constant 0 : index
    %c0_8 = arith.constant 0 : index
    %14 = vector.load %arg4[%c0_7, %c0_8] : memref<32x32xf32, #tpu.memory_space<vmem>>, vector<32x32xf32>
    %cst_9 = arith.constant dense<0.000000e+00> : vector<32x256xf32>
    %15 = tpu.matmul %14, %13, %cst_9 {dimension_numbers = #tpu.dot_dimension_numbers<[1], [0], [0], [1], [0, 0, 1, 1], [], []>} : vector<32x32xf32>, vector<32x256xf32>, vector<32x256xf32> -> vector<32x256xf32>
    %c0_10 = arith.constant 0 : index
    %c0_11 = arith.constant 0 : index
    %16 = vector.load %arg5[%c0_10, %c0_11] : memref<32x1xf32, #tpu.memory_space<vmem>>, vector<32x1xf32>
    %17 = vector.broadcast %16 : vector<32x1xf32> to vector<32x256xf32>
    %18 = arith.addf %15, %17 : vector<32x256xf32>
    %cst_12 = arith.constant 0.000000e+00 : f32
    %19 = vector.broadcast %cst_12 : f32 to vector<32x256xf32>
    %20 = arith.maximumf %18, %19 : vector<32x256xf32>
    %21 = math.absf %18 : vector<32x256xf32>
    %cst_13 = arith.constant 0.000000e+00 : f32
    %22 = vector.broadcast %cst_13 : f32 to vector<32x256xf32>
    %23 = arith.subf %22, %21 : vector<32x256xf32>
    %24 = math.exp %23 : vector<32x256xf32>
    %25 = math.log1p %24 : vector<32x256xf32>
    %26 = arith.addf %20, %25 : vector<32x256xf32>
    %c0_14 = arith.constant 0 : index
    %c0_15 = arith.constant 0 : index
    %27 = vector.load %arg6[%c0_14, %c0_15] : memref<32x32xf32, #tpu.memory_space<vmem>>, vector<32x32xf32>
    %cst_16 = arith.constant dense<0.000000e+00> : vector<32x256xf32>
    %28 = tpu.matmul %27, %26, %cst_16 {dimension_numbers = #tpu.dot_dimension_numbers<[1], [0], [0], [1], [0, 0, 1, 1], [], []>} : vector<32x32xf32>, vector<32x256xf32>, vector<32x256xf32> -> vector<32x256xf32>
    %c0_17 = arith.constant 0 : index
    %c0_18 = arith.constant 0 : index
    %29 = vector.load %arg7[%c0_17, %c0_18] : memref<32x1xf32, #tpu.memory_space<vmem>>, vector<32x1xf32>
    %30 = vector.broadcast %29 : vector<32x1xf32> to vector<32x256xf32>
    %31 = arith.addf %28, %30 : vector<32x256xf32>
    %cst_19 = arith.constant 0.000000e+00 : f32
    %32 = vector.broadcast %cst_19 : f32 to vector<32x256xf32>
    %33 = arith.maximumf %31, %32 : vector<32x256xf32>
    %34 = math.absf %31 : vector<32x256xf32>
    %cst_20 = arith.constant 0.000000e+00 : f32
    %35 = vector.broadcast %cst_20 : f32 to vector<32x256xf32>
    %36 = arith.subf %35, %34 : vector<32x256xf32>
    %37 = math.exp %36 : vector<32x256xf32>
    %38 = math.log1p %37 : vector<32x256xf32>
    %39 = arith.addf %33, %38 : vector<32x256xf32>
    %c0_21 = arith.constant 0 : index
    %c0_22 = arith.constant 0 : index
    %40 = vector.load %arg8[%c0_21, %c0_22] : memref<1x32xf32, #tpu.memory_space<vmem>>, vector<1x32xf32>
    %cst_23 = arith.constant dense<0.000000e+00> : vector<1x256xf32>
    %41 = tpu.matmul %40, %39, %cst_23 {dimension_numbers = #tpu.dot_dimension_numbers<[1], [0], [0], [1], [0, 0, 1, 1], [], []>} : vector<1x32xf32>, vector<32x256xf32>, vector<1x256xf32> -> vector<1x256xf32>
    %c0_24 = arith.constant 0 : index
    %c0_25 = arith.constant 0 : index
    %42 = vector.load %arg9[%c0_24, %c0_25] : memref<1x1xf32, #tpu.memory_space<vmem>>, vector<1x1xf32>
    %43 = vector.broadcast %42 : vector<1x1xf32> to vector<1x256xf32>
    %44 = arith.addf %41, %43 : vector<1x256xf32>
    %c0_26 = arith.constant 0 : index
    %c0_27 = arith.constant 0 : index
    %45 = vector.load %arg10[%c0_26, %c0_27] : memref<1x256xf32, #tpu.memory_space<vmem>>, vector<1x256xf32>
    tpu.vector_store %arg10[%c0_26, %c0_27], %44 {strides = array<i32>} : memref<1x256xf32, #tpu.memory_space<vmem>>, vector<1x256xf32>,
    return
  }
  func.func @transform_0(%arg0: i32) -> (i32, i32) {
    %c0_i32 = arith.constant 0 : i32
    %c0_i32_0 = arith.constant 0 : i32
    return %c0_i32, %arg0 : i32, i32
  }
  func.func @transform_1(%arg0: i32) -> (i32, i32) {
    %c0_i32 = arith.constant 0 : i32
    %c0_i32_0 = arith.constant 0 : i32
    %c0_i32_1 = arith.constant 0 : i32
    return %c0_i32, %c0_i32_0 : i32, i32
  }
  func.func @transform_2(%arg0: i32) -> (i32, i32) {
    %c0_i32 = arith.constant 0 : i32
    %c0_i32_0 = arith.constant 0 : i32
    %c0_i32_1 = arith.constant 0 : i32
    return %c0_i32, %c0_i32_0 : i32, i32
  }
  func.func @transform_3(%arg0: i32) -> (i32, i32) {
    %c0_i32 = arith.constant 0 : i32
    %c0_i32_0 = arith.constant 0 : i32
    %c0_i32_1 = arith.constant 0 : i32
    return %c0_i32, %c0_i32_0 : i32, i32
  }
  func.func @transform_4(%arg0: i32) -> (i32, i32) {
    %c0_i32 = arith.constant 0 : i32
    %c0_i32_0 = arith.constant 0 : i32
    %c0_i32_1 = arith.constant 0 : i32
    return %c0_i32, %c0_i32_0 : i32, i32
  }
  func.func @transform_5(%arg0: i32) -> (i32, i32) {
    %c0_i32 = arith.constant 0 : i32
    %c0_i32_0 = arith.constant 0 : i32
    %c0_i32_1 = arith.constant 0 : i32
    return %c0_i32, %c0_i32_0 : i32, i32
  }
  func.func @transform_6(%arg0: i32) -> (i32, i32) {
    %c0_i32 = arith.constant 0 : i32
    %c0_i32_0 = arith.constant 0 : i32
    %c0_i32_1 = arith.constant 0 : i32
    return %c0_i32, %c0_i32_0 : i32, i32
  }
  func.func @transform_7(%arg0: i32) -> (i32, i32) {
    %c0_i32 = arith.constant 0 : i32
    %c0_i32_0 = arith.constant 0 : i32
    %c0_i32_1 = arith.constant 0 : i32
    return %c0_i32, %c0_i32_0 : i32, i32
  }
  func.func @transform_8(%arg0: i32) -> (i32, i32) {
    %c0_i32 = arith.constant 0 : i32
    %c0_i32_0 = arith.constant 0 : i32
    %c0_i32_1 = arith.constant 0 : i32
    return %c0_i32, %c0_i32_0 : i32, i32
  }
  func.func @transform_9(%arg0: i32) -> (i32, i32) {
    %c0_i32 = arith.constant 0 : i32
    %c0_i32_0 = arith.constant 0 : i32
    return %c0_i32, %arg0 : i32, i32
  }
}

</mosaic_0001>

<bundles_post_ra>
// kernel: critic_forward.1
= control target key start
LH: loop header
LB: loop body
LE: loop exit
PB: predicated region body
PF: predicated region fallthrough
CT: control target
= control target key end

     0   :  { %v1024_v3 = vmov 0.0   ;;  %vm70_vm0 = vcmask 261120   ;;  %v1025_v16 = vmov 0   ;;  %s1490_s0 = inlined_call_operand.vmem [shape: f32[32,256], index: 0, kind: input, shape index: {}]   ;;  %s1491_s8 = inlined_call_operand.<no memory space> [shape: f32[1,1], index: 8, kind: input, shape index: {}]   ;;  %s1492_s1 = inlined_call_operand.vmem [shape: f32[32,32], index: 1, kind: input, shape index: {}]   ;;  %s1493_s2 = inlined_call_operand.vmem [shape: f32[32,1], index: 2, kind: input, shape index: {}]   ;;  %s1494_s4 = inlined_call_operand.vmem [shape: f32[32,1], index: 4, kind: input, shape index: {}]   ;;  %s1495_s6 = inlined_call_operand.vmem [shape: f32[32,1], index: 6, kind: input, shape index: {}]   ;;  %s1496_s3 = inlined_call_operand.vmem [shape: f32[32,32], index: 3, kind: input, shape index: {}]   ;;  %s1497_s5 = inlined_call_operand.vmem [shape: f32[32,32], index: 5, kind: input, shape index: {}]   ;;  %s1498_s7 = inlined_call_operand.vmem [shape: f32[1,32], index: 7, kind: input, shape index: {}]   ;;  %s1499_s9 = inlined_call_operand.vmem [shape: f32[1,256], index: 9, kind: output, shape index: {}]  }
   0x1   :  { %v41_v0 = vld [vmem:[%s1490_s0 + $0x38] sm:$0xff]  ;;  %v40_v1 = vld [vmem:[%s1490_s0 + $0x30] sm:$0xff]  ;;  %v39_v2 = vld [vmem:[%s1490_s0 + $0x28] sm:$0xff]  ;;  %147 = vmatprep.mubr.f32.mxu0 %v1024_v3  ;;  %159 = vmatprep.mubr.f32.mxu1 %v1024_v3  ;;  %v14_v4 = vstv %s1491_s8 }
   0x2   :  { %107 = vmatprep.subr.mxu0 %v41_v0  ;;  %915 = vmatprep.subr.mxu1 %v41_v0  ;;  %v38_v5 = vld [vmem:[%s1490_s0 + $0x20] sm:$0xff]  ;;  %15 = vst [vmem:[#allocation2] sm:$0x1] %v14_v4  ;;  %v37_v6 = vld [vmem:[%s1490_s0 + $0x18] sm:$0xff]  ;;  %v36_v7 = vld [vmem:[%s1490_s0 + $0x10] sm:$0xff] }
   0x3   :  { %108 = vmatpush1.msra.mxu0 %v40_v1  ;;  %919 = vmatpush1.msra.mxu1 %v40_v1  ;;  %v35_v8 = vld [vmem:[%s1490_s0 + $0x8] sm:$0xff]  ;;  %v34_v9 = vld [vmem:[%s1490_s0] sm:$0xff]  ;;  %v44_v11 = vld [vmem:[%s1492_s1 + $0x10] sm:$0xff] }
   0x4   :  { %109 = vmatprep.subr.mxu0 %v39_v2  ;;  %916 = vmatprep.subr.mxu1 %v39_v2  ;;  %v42_v10 = vld [vmem:[%s1492_s1] sm:$0xff]  ;;  %v49_v12 = vld [vmem:[%s1493_s2 + $0x18] sm:$0xff]  ;;  %v47_v13 = vld [vmem:[%s1493_s2 + $0x8] sm:$0xff] }
   0x5   :  { %110 = vmatpush1.msra.mxu0 %v38_v5  ;;  %920 = vmatpush1.msra.mxu1 %v38_v5  ;;  %v43_v14 = vld [vmem:[%s1492_s1 + $0x8] sm:$0xff]  ;;  %v45_v15 = vld [vmem:[%s1492_s1 + $0x18] sm:$0xff]  ;;  %v48_v17 = vld [vmem:[%s1493_s2 + $0x10] sm:$0xff] }
   0x6   :  { %111 = vmatprep.subr.mxu0 %v37_v6  ;;  %917 = vmatprep.subr.mxu1 %v37_v6  ;;  %v46_v18 = vld [vmem:[%s1493_s2] sm:$0xff]  ;;  %v299_v19 = vld [vmem:[%s1494_s4 + $0x18] sm:$0xff]  ;;  %v298_v20 = vld [vmem:[%s1494_s4 + $0x10] sm:$0xff] }
   0x7   :  { %112 = vmatpush1.msra.mxu0 %v36_v7  ;;  %921 = vmatpush1.msra.mxu1 %v36_v7  ;;  %v297_v21 = vld [vmem:[%s1494_s4 + $0x8] sm:$0xff]  ;;  %v296_v22 = vld [vmem:[%s1494_s4] sm:$0xff]  ;;  %v548_v23 = vld [vmem:[%s1495_s6 + $0x18] sm:$0xff] }
   0x8   :  { %113 = vmatprep.subr.mxu0 %v35_v8  ;;  %918 = vmatprep.subr.mxu1 %v35_v8  ;;  %v547_v24 = vld [vmem:[%s1495_s6 + $0x10] sm:$0xff]  ;;  %v546_v25 = vld [vmem:[%s1495_s6 + $0x8] sm:$0xff]  ;;  %v545_v26 = vld [vmem:[%s1495_s6] sm:$0xff] }
   0x9   :  { %114 = vmatpush1.msra.mxu0 %v34_v9  ;;  %922 = vmatpush1.msra.mxu1 %v34_v9  ;;  %v791_v27 = vld [vmem:[#allocation2] sm:$0x1] }
   0xa   :  { %902 = vmatmul.mubr.msk.f32.vlgmr.msra.gmra.mxu0 %vm70_vm0, %v42_v10  ;;  %904 = vmatmul.mubr.msk.f32.vlgmr.msra.gmra.mxu1 %vm70_vm0, %v44_v11 }
   0xb   :  { %153 = vmatprep.mubr.f32.mxu0 %v1024_v3  ;;  %165 = vmatprep.mubr.f32.mxu1 %v1024_v3 }
   0xc   :  { %926 = vset.pattern.permute.xlu0 %v1025_v16  ;;  %927 = vset.pattern.permute.xlu1 %v1025_v16 }
   0xd   :  { %67 = vperm.xlu0 %926, %v49_v12   ;;  %57 = vperm.xlu1 %927, %v47_v13  }
   0xe   :  { %903 = vmatmul.mubr.msk.f32.gmra.mxu0 %vm70_vm0, %v43_v14  ;;  %905 = vmatmul.mubr.msk.f32.gmra.mxu1 %vm70_vm0, %v45_v15 }
   0xf   :  { %396 = vmatprep.mubr.f32.mxu1 %v1024_v3  ;;  %645 = vmatprep.mubr.f32.mxu0 %v1024_v3 }
  0x11   :  { %62 = vperm.xlu0 %926, %v48_v17   ;;  %52 = vperm.xlu1 %927, %v46_v18  }
  0x15   :  { %317 = vperm.xlu0 %926, %v299_v19   ;;  %312 = vperm.xlu1 %927, %v298_v20  }
  0x19   :  { %307 = vperm.xlu0 %926, %v297_v21   ;;  %302 = vperm.xlu1 %927, %v296_v22  }
  0x1d   :  { %566 = vperm.xlu0 %926, %v548_v23   ;;  %561 = vperm.xlu1 %927, %v547_v24  }
  0x21   :  { %556 = vperm.xlu0 %926, %v546_v25   ;;  %551 = vperm.xlu1 %927, %v545_v26  }
  0x25   :  { %794 = vperm.xlu0 %926, %v791_v27  }
  0x88   :  { %v68_v28 = vpop.permute.xlu0 %67  ;;  %v58_v29 = vpop.permute.xlu1 %57 }
  0x8c   :  { %v63_v30 = vpop.permute.xlu0 %62  ;;  %v53_v31 = vpop.permute.xlu1 %52 }
  0xca   :  { %v149_v32 = vpop.f32.mrf.mxu0  ;;  %v161_v33 = vpop.f32.mrf.mxu1 }
  0xcb   :  { %v1162_v34 = vadd.f32 %v149_v32, %v53_v31  ;;  %v1164_v35 = vadd.f32 %v161_v33, %v63_v30 }
  0xcc   :  { %v151_v36 = vpop.f32.mrf.mxu0  ;;  %v163_v37 = vpop.f32.mrf.mxu1 }
  0xcd   :  { %v180_v38 = vand.u32 2147483647, %v1162_v34  ;;  %v184_v39 = vand.u32 2147483647, %v1164_v35  ;;  %v1168_v40 = vadd.f32 %v151_v36, %v53_v31  ;;  %v1170_v41 = vadd.f32 %v163_v37, %v63_v30 }
  0xce   :  { %v155_v42 = vpop.f32.mrf.mxu0  ;;  %v167_v43 = vpop.f32.mrf.mxu1  ;;  %v176_v30 = vmax.f32 %v1164_v35, 0.0  ;;  %v292_v35 = vld [vmem:[%s1496_s3] sm:$0xff] }
  0xcf   :  { %v188_v44 = vsub.f32 0.0, %v180_v38  ;;  %v192_v45 = vsub.f32 0.0, %v184_v39  ;;  %v1172_v46 = vadd.f32 %v155_v42, %v58_v29  ;;  %v1174_v47 = vadd.f32 %v167_v43, %v68_v28 }
  0xd0   :  { %v181_v48 = vand.u32 2147483647, %v1168_v40  ;;  %v185_v49 = vand.u32 2147483647, %v1170_v41  ;;  %v157_v50 = vpop.f32.mrf.mxu0  ;;  %v169_v51 = vpop.f32.mrf.mxu1  ;;  %v177_v32 = vmax.f32 %v1170_v41, 0.0 }
  0xd1   :  { %v196_v52 = vmul.f32 1.442695, %v188_v44  ;;  %v204_v53 = vmul.f32 1.442695, %v192_v45  ;;  %v182_v56 = vand.u32 2147483647, %v1172_v46  ;;  %v1180_v58 = vadd.f32 %v157_v50, %v58_v29 }
  0xd2   :  { %v189_v54 = vsub.f32 0.0, %v181_v48  ;;  %v193_v55 = vsub.f32 0.0, %v185_v49  ;;  %v186_v57 = vand.u32 2147483647, %v1174_v47  ;;  %v1182_v59 = vadd.f32 %v169_v51, %v68_v28 }
  0xd3   :  { %928 = vpow2.f32 %v204_v53  ;;  %v190_v61 = vsub.f32 0.0, %v182_v56  ;;  %v183_v63 = vand.u32 2147483647, %v1180_v58  ;;  %v178_v37 = vmax.f32 %v1174_v47, 0.0 }
  0xd4   :  { %v206_v60 = vmul.f32 1.442695, %v193_v55  ;;  %v194_v62 = vsub.f32 0.0, %v186_v57  ;;  %930 = vpow2.f32 %v196_v52  ;;  %v198_v0 = vmul.f32 1.442695, %v189_v54 }
  0xd5   :  { %v200_v1 = vmul.f32 1.442695, %v190_v61  ;;  %v187_v2 = vand.u32 2147483647, %v1182_v59  ;;  %v191_v5 = vsub.f32 0.0, %v183_v63  ;;  %v175_v39 = vmax.f32 %v1180_v58, 0.0  ;;  %v313_v58 = vpop.permute.xlu1 %312 }
  0xd6   :  { %932 = vpow2.f32 %v206_v60  ;;  %v208_v4 = vmul.f32 1.442695, %v194_v62  ;;  %v179_v44 = vmax.f32 %v1182_v59, 0.0 }
  0xd7   :  { %934 = vpow2.f32 %v200_v1  ;;  %v195_v6 = vsub.f32 0.0, %v187_v2  ;;  %v202_v7 = vmul.f32 1.442695, %v191_v5 }
  0xd8   :  { %936 = vpow2.f32 %v208_v4 }
  0xd9   :  { %938 = vpow2.f32 %v198_v0  ;;  %v210_v8 = vmul.f32 1.442695, %v195_v6 }
  0xda   :  { %940 = vpow2.f32 %v202_v7 }
  0xdb   :  { %942 = vpow2.f32 %v210_v8 }
  0xe0   :  { %v929_v9 = vpop.eup %928 }
  0xe1   :  { %v1186_v10 = vpop.eup %930  ;;  %v248_v11 = vadd.f32 1.0, %v929_v9  ;;  %v251_v25 = vmul.f32 -0.5, %v929_v9  ;;  %v254_v31 = vand.u32 2147483647, %v929_v9 }
  0xe2   :  { %v212_v16 = vadd.f32 1.0, %v1186_v10  ;;  %v215_v27 = vmul.f32 -0.5, %v1186_v10  ;;  %v218_v51 = vand.u32 2147483647, %v1186_v10 }
  0xe3   :  { %v933_v12 = vpop.eup %932  ;;  %944 = vlog2.f32 %v248_v11  ;;  %v252_v36 = vadd.f32 1.0, %v251_v25  ;;  %vm1207_vm1 = vcmp.lt.f32.partialorder %v254_v31, 0.0004427343 }
  0xe4   :  { %v1188_v13 = vpop.eup %934  ;;  %v257_v14 = vadd.f32 1.0, %v933_v12  ;;  %v260_v29 = vmul.f32 -0.5, %v933_v12  ;;  %v263_v45 = vand.u32 2147483647, %v933_v12  ;;  %v216_v50 = vadd.f32 1.0, %v215_v27 }
  0xe5   :  { %v937_v15 = vpop.eup %936  ;;  %v230_v18 = vadd.f32 1.0, %v1188_v13  ;;  %v233_v26 = vmul.f32 -0.5, %v1188_v13  ;;  %v253_v59 = vmul.f32 %v929_v9, %v252_v36  ;;  %v236_v60 = vand.u32 2147483647, %v1188_v13 }
  0xe6   :  { %v1191_v17 = vpop.eup %938  ;;  %v266_v19 = vadd.f32 1.0, %v937_v15  ;;  %946 = vlog2.f32 %v257_v14  ;;  %v269_v28 = vmul.f32 -0.5, %v937_v15  ;;  %v272_v38 = vand.u32 2147483647, %v937_v15 }
  0xe7   :  { %v1194_v20 = vpop.eup %940  ;;  %v221_v23 = vadd.f32 1.0, %v1191_v17  ;;  %v234_v43 = vadd.f32 1.0, %v233_v26  ;;  %v261_v41 = vadd.f32 1.0, %v260_v29  ;;  %v224_v56 = vmul.f32 -0.5, %v1191_v17 }
  0xe8   :  { %v943_v21 = vpop.eup %942  ;;  %948 = vlog2.f32 %v266_v19  ;;  %v239_v24 = vadd.f32 1.0, %v1194_v20  ;;  %v242_v48 = vmul.f32 -0.5, %v1194_v20  ;;  %v270_v52 = vadd.f32 1.0, %v269_v28 }
  0xe9   :  { %950 = vlog2.f32 %v212_v16  ;;  %v275_v22 = vadd.f32 1.0, %v943_v21  ;;  %v278_v33 = vmul.f32 -0.5, %v943_v21  ;;  %v281_v55 = vand.u32 2147483647, %v943_v21 }
  0xea   :  { %952 = vlog2.f32 %v230_v18  ;;  %vm1213_vm2 = vcmp.lt.f32.partialorder %v272_v38, 0.0004427343  ;;  %v235_v0 = vmul.f32 %v1188_v13, %v234_v43  ;;  %vm1218_vm3 = vcmp.lt.f32.partialorder %v263_v45, 0.0004427343 }
  0xeb   :  { %954 = vlog2.f32 %v275_v22  ;;  %v279_v47 = vadd.f32 1.0, %v278_v33  ;;  %v243_v4 = vadd.f32 1.0, %v242_v48  ;;  %v271_v7 = vmul.f32 %v937_v15, %v270_v52  ;;  %v303_v52 = vpop.permute.xlu1 %302 }
  0xec   :  { %956 = vlog2.f32 %v239_v24  ;;  %v262_v8 = vmul.f32 %v933_v12, %v261_v41  ;;  %v245_v9 = vand.u32 2147483647, %v1194_v20  ;;  %vm282_vm4 = vcmp.lt.f32.partialorder %v281_v55, 0.0004427343 }
  0xed   :  { %958 = vlog2.f32 %v221_v23  ;;  %v280_v16 = vmul.f32 %v943_v21, %v279_v47  ;;  %v225_v18 = vadd.f32 1.0, %v224_v56  ;;  %v227_v24 = vand.u32 2147483647, %v1191_v17 }
  0xee   :  { %v244_v12 = vmul.f32 %v1194_v20, %v243_v4  ;;  %vm1231_vm5 = vcmp.lt.f32.partialorder %v245_v9, 0.0004427343  ;;  %vm1235_vm6 = vcmp.lt.f32.partialorder %v236_v60, 0.0004427343  ;;  %v217_v38 = vmul.f32 %v1186_v10, %v216_v50 }
  0xef   :  { %v226_v20 = vmul.f32 %v1191_v17, %v225_v18  ;;  %vm228_vm7 = vcmp.lt.f32.partialorder %v227_v24, 0.0004427343  ;;  %vm219_vm8 = vcmp.lt.f32.partialorder %v218_v51, 0.0004427343  ;;  %v174_v45 = vmax.f32 %v1172_v46, 0.0  ;;  %v295_v46 = vld [vmem:[%s1496_s3 + $0x18] sm:$0xff] }
  0xf0   :  { %v945_v42 = vpop.eup %944  ;;  %v172_v17 = vmax.f32 %v1162_v34, 0.0  ;;  %v293_v34 = vld [vmem:[%s1496_s3 + $0x8] sm:$0xff] }
  0xf1   :  { %v250_v6 = vmul.f32 0.6931472, %v945_v42 }
  0xf3   :  { %v947_v49 = vpop.eup %946  ;;  %v256_v21 = vsel %vm1207_vm1, %v253_v59, %v250_v6 }
  0xf4   :  { %v259_v1 = vmul.f32 0.6931472, %v947_v49  ;;  %v173_v49 = vmax.f32 %v1168_v40, 0.0  ;;  %v294_v40 = vld [vmem:[%s1496_s3 + $0x10] sm:$0xff] }
  0xf5   :  { %v949_v53 = vpop.eup %948 }
  0xf6   :  { %v951_v57 = vpop.eup %950  ;;  %v268_v61 = vmul.f32 0.6931472, %v949_v53  ;;  %v265_v15 = vsel %vm1218_vm3, %v262_v8, %v259_v1 }
  0xf7   :  { %v953_v63 = vpop.eup %952  ;;  %v214_v27 = vmul.f32 0.6931472, %v951_v57  ;;  %v289_v43 = vadd.f32 %v265_v15, %v177_v32 }
  0xf8   :  { %v955_v5 = vpop.eup %954  ;;  %v232_v22 = vmul.f32 0.6931472, %v953_v63  ;;  %v274_v13 = vsel %vm1213_vm2, %v271_v7, %v268_v61 }
  0xf9   :  { %v957_v11 = vpop.eup %956  ;;  %v277_v14 = vmul.f32 0.6931472, %v955_v5  ;;  %v290_v33 = vadd.f32 %v274_v13, %v178_v37  ;;  %v220_v48 = vsel %vm219_vm8, %v217_v38, %v214_v27 }
  0xfa   :  { %v959_v19 = vpop.eup %958  ;;  %v241_v23 = vmul.f32 0.6931472, %v957_v11  ;;  %v238_v42 = vsel %vm1235_vm6, %v235_v0, %v232_v22  ;;  %v284_v51 = vadd.f32 %v220_v48, %v172_v17 }
  0xfb   :  { %v283_v25 = vsel %vm282_vm4, %v280_v16, %v277_v14  ;;  %v223_v26 = vmul.f32 0.6931472, %v959_v19  ;;  %v286_v50 = vadd.f32 %v238_v42, %v174_v45 }
  0xfc   :  { %v291_v28 = vadd.f32 %v283_v25, %v179_v44  ;;  %v247_v36 = vsel %vm1231_vm5, %v244_v12, %v241_v23  ;;  %v288_v44 = vadd.f32 %v256_v21, %v176_v30  ;;  %v318_v30 = vpop.permute.xlu0 %317 }
  0xfd   :  { %v229_v37 = vsel %vm228_vm7, %v226_v20, %v223_v26  ;;  %v287_v10 = vadd.f32 %v247_v36, %v175_v39 }
  0xfe   :  { %356 = vmatprep.subr.mxu1 %v291_v28  ;;  %v285_v32 = vadd.f32 %v229_v37, %v173_v49 }
  0xff   :  { %357 = vmatpush1.msra.mxu1 %v290_v33 }
 0x100   :  { %358 = vmatprep.subr.mxu1 %v289_v43  ;;  %v308_v47 = vpop.permute.xlu0 %307 }
 0x101   :  { %359 = vmatpush1.msra.mxu1 %v288_v44 }
 0x102   :  { %360 = vmatprep.subr.mxu1 %v287_v10 }
 0x103   :  { %361 = vmatpush1.msra.mxu1 %v286_v50 }
 0x104   :  { %362 = vmatprep.subr.mxu1 %v285_v32 }
 0x105   :  { %363 = vmatpush1.msra.mxu1 %v284_v51 }
 0x106   :  { %906 = vmatmul.mubr.msk.f32.vlgmr.msra.gmra.mxu1 %vm70_vm0, %v292_v35 }
 0x107   :  { %402 = vmatprep.mubr.f32.mxu1 %v1024_v3 }
 0x10a   :  { %907 = vmatmul.mubr.msk.f32.gmra.mxu1 %vm70_vm0, %v293_v34 }
 0x10b   :  { %408 = vmatprep.mubr.f32.mxu1 %v1024_v3 }
 0x10e   :  { %908 = vmatmul.mubr.msk.f32.gmra.mxu1 %vm70_vm0, %v294_v40 }
 0x10f   :  { %414 = vmatprep.mubr.f32.mxu1 %v1024_v3 }
 0x112   :  { %909 = vmatmul.mubr.msk.f32.gmra.mxu1 %vm70_vm0, %v295_v46 }
 0x113   :  { %868 = vmatprep.mubr.f32.mxu1 %v1024_v3 }
 0x1c6   :  { %v398_v39 = vpop.f32.mrf.mxu1 }
 0x1c7   :  { %v1272_v53 = vadd.f32 %v398_v39, %v303_v52 }
 0x1c8   :  { %v400_v41 = vpop.f32.mrf.mxu1 }
 0x1c9   :  { %v1274_v54 = vadd.f32 %v400_v41, %v303_v52  ;;  %v429_v60 = vand.u32 2147483647, %v1272_v53 }
 0x1ca   :  { %v404_v55 = vpop.f32.mrf.mxu1 }
 0x1cb   :  { %v430_v56 = vand.u32 2147483647, %v1274_v54  ;;  %v1277_v57 = vadd.f32 %v404_v55, %v308_v47  ;;  %v437_v7 = vsub.f32 0.0, %v429_v60 }
 0x1cc   :  { %v406_v59 = vpop.f32.mrf.mxu1 }
 0x1cd   :  { %v438_v61 = vsub.f32 0.0, %v430_v56  ;;  %v431_v62 = vand.u32 2147483647, %v1277_v57  ;;  %v1281_v63 = vadd.f32 %v406_v59, %v308_v47  ;;  %v445_v24 = vmul.f32 1.442695, %v437_v7 }
 0x1ce   :  { %v410_v0 = vpop.f32.mrf.mxu1 }
 0x1cf   :  { %v447_v1 = vmul.f32 1.442695, %v438_v61  ;;  %v1283_v2 = vadd.f32 %v410_v0, %v313_v58  ;;  %v439_v4 = vsub.f32 0.0, %v431_v62  ;;  %v432_v5 = vand.u32 2147483647, %v1281_v63 }
 0x1d0   :  { %v412_v6 = vpop.f32.mrf.mxu1  ;;  %v424_v46 = vmax.f32 %v1281_v63, 0.0  ;;  %v544_v63 = vld [vmem:[%s1497_s5 + $0x18] sm:$0xff] }
 0x1d1   :  { %v433_v8 = vand.u32 2147483647, %v1283_v2  ;;  %v440_v9 = vsub.f32 0.0, %v432_v5  ;;  %v1287_v11 = vadd.f32 %v412_v6, %v313_v58  ;;  %960 = vpow2.f32 %v447_v1 }
 0x1d2   :  { %v416_v14 = vpop.f32.mrf.mxu1  ;;  %v449_v19 = vmul.f32 1.442695, %v439_v4  ;;  %v425_v39 = vmax.f32 %v1283_v2, 0.0  ;;  %v562_v2 = vpop.permute.xlu1 %561 }
 0x1d3   :  { %v441_v16 = vsub.f32 0.0, %v433_v8  ;;  %v1289_v18 = vadd.f32 %v416_v14, %v318_v30  ;;  %v451_v22 = vmul.f32 1.442695, %v440_v9  ;;  %v434_v13 = vand.u32 2147483647, %v1287_v11 }
 0x1d4   :  { %v418_v23 = vpop.f32.mrf.mxu1  ;;  %v426_v52 = vmax.f32 %v1287_v11, 0.0 }
 0x1d5   :  { %v453_v25 = vmul.f32 1.442695, %v441_v16  ;;  %v435_v15 = vand.u32 2147483647, %v1289_v18  ;;  %v1293_v12 = vadd.f32 %v418_v23, %v318_v30  ;;  %962 = vpow2.f32 %v451_v22 }
 0x1d6   :  { %v442_v26 = vsub.f32 0.0, %v434_v13  ;;  %v427_v56 = vmax.f32 %v1289_v18, 0.0 }
 0x1d7   :  { %964 = vpow2.f32 %v453_v25  ;;  %v443_v27 = vsub.f32 0.0, %v435_v15  ;;  %v436_v21 = vand.u32 2147483647, %v1293_v12  ;;  %v428_v59 = vmax.f32 %v1293_v12, 0.0 }
 0x1d8   :  { %966 = vpow2.f32 %v449_v19  ;;  %v455_v28 = vmul.f32 1.442695, %v442_v26 }
 0x1d9   :  { %968 = vpow2.f32 %v445_v24  ;;  %v457_v29 = vmul.f32 1.442695, %v443_v27  ;;  %v444_v31 = vsub.f32 0.0, %v436_v21 }
 0x1da   :  { %970 = vpow2.f32 %v455_v28 }
 0x1db   :  { %972 = vpow2.f32 %v457_v29  ;;  %v459_v33 = vmul.f32 1.442695, %v444_v31 }
 0x1dd   :  { %974 = vpow2.f32 %v459_v33 }
 0x1de   :  { %v1296_v36 = vpop.eup %960 }
 0x1df   :  { %v470_v38 = vadd.f32 1.0, %v1296_v36  ;;  %v473_v61 = vmul.f32 -0.5, %v1296_v36  ;;  %v476_v11 = vand.u32 2147483647, %v1296_v36 }
 0x1e1   :  { %976 = vlog2.f32 %v470_v38  ;;  %v474_v15 = vadd.f32 1.0, %v473_v61  ;;  %vm477_vm15 = vcmp.lt.f32.partialorder %v476_v11, 0.0004427343 }
 0x1e2   :  { %v1298_v20 = vpop.eup %962 }
 0x1e3   :  { %v488_v43 = vadd.f32 1.0, %v1298_v20  ;;  %v491_v60 = vmul.f32 -0.5, %v1298_v20  ;;  %v494_v22 = vand.u32 2147483647, %v1298_v20 }
 0x1e4   :  { %v965_v42 = vpop.eup %964 }
 0x1e5   :  { %v1302_v44 = vpop.eup %966  ;;  %v497_v45 = vadd.f32 1.0, %v965_v42  ;;  %978 = vlog2.f32 %v488_v43  ;;  %v500_v58 = vmul.f32 -0.5, %v965_v42  ;;  %v503_v5 = vand.u32 2147483647, %v965_v42 }
 0x1e6   :  { %v1304_v37 = vpop.eup %968  ;;  %v479_v10 = vadd.f32 1.0, %v1302_v44  ;;  %v482_v40 = vmul.f32 -0.5, %v1302_v44  ;;  %v485_v16 = vand.u32 2147483647, %v1302_v44  ;;  %v492_v25 = vadd.f32 1.0, %v491_v60 }
 0x1e7   :  { %v1306_v48 = vpop.eup %970  ;;  %980 = vlog2.f32 %v497_v45  ;;  %v461_v51 = vadd.f32 1.0, %v1304_v37  ;;  %v464_v34 = vmul.f32 -0.5, %v1304_v37  ;;  %v467_v1 = vand.u32 2147483647, %v1304_v37 }
 0x1e8   :  { %v973_v49 = vpop.eup %972  ;;  %v506_v17 = vadd.f32 1.0, %v1306_v48  ;;  %v509_v47 = vmul.f32 -0.5, %v1306_v48  ;;  %v483_v4 = vadd.f32 1.0, %v482_v40  ;;  %v501_v7 = vadd.f32 1.0, %v500_v58 }
 0x1e9   :  { %v515_v50 = vadd.f32 1.0, %v973_v49  ;;  %v518_v30 = vmul.f32 -0.5, %v973_v49  ;;  %v465_v0 = vadd.f32 1.0, %v464_v34  ;;  %v521_v9 = vand.u32 2147483647, %v973_v49 }
 0x1ea   :  { %v975_v32 = vpop.eup %974  ;;  %982 = vlog2.f32 %v506_v17  ;;  %v510_v19 = vadd.f32 1.0, %v509_v47  ;;  %v512_v24 = vand.u32 2147483647, %v1306_v48  ;;  %v484_v26 = vmul.f32 %v1302_v44, %v483_v4 }
 0x1eb   :  { %984 = vlog2.f32 %v515_v50  ;;  %v524_v35 = vadd.f32 1.0, %v975_v32  ;;  %v527_v41 = vmul.f32 -0.5, %v975_v32  ;;  %v519_v8 = vadd.f32 1.0, %v518_v30 }
 0x1ec   :  { %986 = vlog2.f32 %v479_v10  ;;  %v530_v23 = vand.u32 2147483647, %v975_v32  ;;  %vm1327_vm9 = vcmp.lt.f32.partialorder %v503_v5, 0.0004427343  ;;  %v502_v33 = vmul.f32 %v965_v42, %v501_v7 }
 0x1ed   :  { %988 = vlog2.f32 %v524_v35  ;;  %v528_v18 = vadd.f32 1.0, %v527_v41  ;;  %v520_v38 = vmul.f32 %v973_v49, %v519_v8  ;;  %vm1331_vm10 = vcmp.lt.f32.partialorder %v521_v9, 0.0004427343  ;;  %v552_v8 = vpop.permute.xlu1 %551 }
 0x1ee   :  { %990 = vlog2.f32 %v461_v51  ;;  %v977_v55 = vpop.eup %976  ;;  %v511_v50 = vmul.f32 %v1306_v48, %v510_v19  ;;  %vm531_vm11 = vcmp.lt.f32.partialorder %v530_v23, 0.0004427343  ;;  %vm1338_vm12 = vcmp.lt.f32.partialorder %v512_v24, 0.0004427343 }
 0x1ef   :  { %v529_v17 = vmul.f32 %v975_v32, %v528_v18  ;;  %v493_v40 = vmul.f32 %v1298_v20, %v492_v25  ;;  %v472_v58 = vmul.f32 0.6931472, %v977_v55  ;;  %vm1347_vm13 = vcmp.lt.f32.partialorder %v494_v22, 0.0004427343 }
 0x1f0   :  { %vm1351_vm14 = vcmp.lt.f32.partialorder %v485_v16, 0.0004427343  ;;  %v475_v20 = vmul.f32 %v1296_v36, %v474_v15  ;;  %v466_v55 = vmul.f32 %v1304_v37, %v465_v0  ;;  %vm468_vm1 = vcmp.lt.f32.partialorder %v467_v1, 0.0004427343 }
 0x1f1   :  { %v423_v4 = vmax.f32 %v1277_v57, 0.0  ;;  %v422_v7 = vmax.f32 %v1274_v54, 0.0  ;;  %v421_v37 = vmax.f32 %v1272_v53, 0.0  ;;  %v541_v57 = vld [vmem:[%s1497_s5] sm:$0xff]  ;;  %v542_v53 = vld [vmem:[%s1497_s5 + $0x8] sm:$0xff]  ;;  %v543_v54 = vld [vmem:[%s1497_s5 + $0x10] sm:$0xff] }
 0x1f2   :  { %v979_v62 = vpop.eup %978 }
 0x1f3   :  { %v490_v44 = vmul.f32 0.6931472, %v979_v62 }
 0x1f4   :  { %v981_v6 = vpop.eup %980 }
 0x1f5   :  { %v499_v31 = vmul.f32 0.6931472, %v981_v6  ;;  %v496_v61 = vsel %vm1347_vm13, %v493_v40, %v490_v44 }
 0x1f6   :  { %v536_v36 = vadd.f32 %v496_v61, %v424_v46  ;;  %v567_v46 = vpop.permute.xlu0 %566 }
 0x1f7   :  { %v983_v14 = vpop.eup %982  ;;  %v505_v48 = vsel %vm1327_vm9, %v502_v33, %v499_v31 }
 0x1f8   :  { %v985_v13 = vpop.eup %984  ;;  %v508_v28 = vmul.f32 0.6931472, %v983_v14  ;;  %v537_v5 = vadd.f32 %v505_v48, %v425_v39 }
 0x1f9   :  { %v987_v12 = vpop.eup %986  ;;  %v517_v21 = vmul.f32 0.6931472, %v985_v13 }
 0x1fa   :  { %v989_v29 = vpop.eup %988  ;;  %v481_v51 = vmul.f32 0.6931472, %v987_v12  ;;  %v514_v49 = vsel %vm1338_vm12, %v511_v50, %v508_v28  ;;  %v557_v16 = vpop.permute.xlu0 %556 }
 0x1fb   :  { %v991_v45 = vpop.eup %990  ;;  %v526_v10 = vmul.f32 0.6931472, %v989_v29  ;;  %v523_v35 = vsel %vm1331_vm10, %v520_v38, %v517_v21 }
 0x1fc   :  { %v463_v32 = vmul.f32 0.6931472, %v991_v45  ;;  %v539_v60 = vadd.f32 %v523_v35, %v427_v56  ;;  %v487_v62 = vsel %vm1351_vm14, %v484_v26, %v481_v51  ;;  %v478_v56 = vsel %vm477_vm15, %v475_v20, %v472_v58 }
 0x1fd   :  { %v532_v42 = vsel %vm531_vm11, %v529_v17, %v526_v10  ;;  %v535_v0 = vadd.f32 %v487_v62, %v423_v4 }
 0x1fe   :  { %v540_v30 = vadd.f32 %v532_v42, %v428_v59  ;;  %v538_v59 = vadd.f32 %v514_v49, %v426_v52  ;;  %v469_v6 = vsel %vm468_vm1, %v466_v55, %v463_v32  ;;  %v534_v52 = vadd.f32 %v478_v56, %v422_v7 }
 0x1ff   :  { %v533_v1 = vadd.f32 %v469_v6, %v421_v37 }
 0x200   :  { %605 = vmatprep.subr.mxu0 %v540_v30 }
 0x201   :  { %606 = vmatpush1.msra.mxu0 %v539_v60 }
 0x202   :  { %607 = vmatprep.subr.mxu0 %v538_v59 }
 0x203   :  { %608 = vmatpush1.msra.mxu0 %v537_v5 }
 0x204   :  { %609 = vmatprep.subr.mxu0 %v536_v36 }
 0x205   :  { %610 = vmatpush1.msra.mxu0 %v535_v0 }
 0x206   :  { %611 = vmatprep.subr.mxu0 %v534_v52 }
 0x207   :  { %612 = vmatpush1.msra.mxu0 %v533_v1 }
 0x208   :  { %910 = vmatmul.mubr.msk.f32.vlgmr.msra.gmra.mxu0 %vm70_vm0, %v541_v57 }
 0x209   :  { %651 = vmatprep.mubr.f32.mxu0 %v1024_v3 }
 0x20c   :  { %911 = vmatmul.mubr.msk.f32.gmra.mxu0 %vm70_vm0, %v542_v53 }
 0x20d   :  { %657 = vmatprep.mubr.f32.mxu0 %v1024_v3 }
 0x210   :  { %912 = vmatmul.mubr.msk.f32.gmra.mxu0 %vm70_vm0, %v543_v54 }
 0x211   :  { %663 = vmatprep.mubr.f32.mxu0 %v1024_v3 }
 0x214   :  { %913 = vmatmul.mubr.msk.f32.gmra.mxu0 %vm70_vm0, %v544_v63 }
 0x2c8   :  { %v647_v39 = vpop.f32.mrf.mxu0 }
 0x2c9   :  { %v1387_v11 = vadd.f32 %v647_v39, %v552_v8 }
 0x2ca   :  { %v649_v9 = vpop.f32.mrf.mxu0 }
 0x2cb   :  { %v1389_v14 = vadd.f32 %v649_v9, %v552_v8  ;;  %v678_v13 = vand.u32 2147483647, %v1387_v11 }
 0x2cc   :  { %v653_v18 = vpop.f32.mrf.mxu0 }
 0x2cd   :  { %v679_v19 = vand.u32 2147483647, %v1389_v14  ;;  %v1392_v3 = vadd.f32 %v653_v18, %v557_v16  ;;  %v686_v29 = vsub.f32 0.0, %v678_v13 }
 0x2ce   :  { %v655_v22 = vpop.f32.mrf.mxu0 }
 0x2cf   :  { %v687_v23 = vsub.f32 0.0, %v679_v19  ;;  %v680_v24 = vand.u32 2147483647, %v1392_v3  ;;  %v1396_v25 = vadd.f32 %v655_v22, %v557_v16  ;;  %v694_v35 = vmul.f32 1.442695, %v686_v29 }
 0x2d0   :  { %v659_v15 = vpop.f32.mrf.mxu0 }
 0x2d1   :  { %v696_v12 = vmul.f32 1.442695, %v687_v23  ;;  %v1398_v26 = vadd.f32 %v659_v15, %v562_v2  ;;  %v688_v27 = vsub.f32 0.0, %v680_v24  ;;  %v681_v21 = vand.u32 2147483647, %v1396_v25 }
 0x2d2   :  { %v661_v28 = vpop.f32.mrf.mxu0  ;;  %v673_v54 = vmax.f32 %v1396_v25, 0.0  ;;  %v1026_v25 = vmov 1966171168  }
 0x2d3   :  { %v682_v31 = vand.u32 2147483647, %v1398_v26  ;;  %v689_v33 = vsub.f32 0.0, %v681_v21  ;;  %v1402_v38 = vadd.f32 %v661_v28, %v562_v2  ;;  %992 = vpow2.f32 %v696_v12 }
 0x2d4   :  { %v665_v43 = vpop.f32.mrf.mxu0  ;;  %v698_v17 = vmul.f32 1.442695, %v688_v27 }
 0x2d5   :  { %v690_v45 = vsub.f32 0.0, %v682_v31  ;;  %v1404_v10 = vadd.f32 %v665_v43, %v567_v46  ;;  %v700_v50 = vmul.f32 1.442695, %v689_v33  ;;  %v683_v44 = vand.u32 2147483647, %v1402_v38 }
 0x2d6   :  { %v667_v51 = vpop.f32.mrf.mxu0  ;;  %v675_v39 = vmax.f32 %v1402_v38, 0.0 }
 0x2d7   :  { %v702_v34 = vmul.f32 1.442695, %v690_v45  ;;  %v684_v42 = vand.u32 2147483647, %v1404_v10  ;;  %v1408_v49 = vadd.f32 %v667_v51, %v567_v46  ;;  %994 = vpow2.f32 %v700_v50 }
 0x2d8   :  { %v691_v40 = vsub.f32 0.0, %v683_v44  ;;  %v674_v46 = vmax.f32 %v1398_v26, 0.0  ;;  %v676_v18 = vmax.f32 %v1404_v10, 0.0 }
 0x2d9   :  { %996 = vpow2.f32 %v702_v34  ;;  %v692_v58 = vsub.f32 0.0, %v684_v42  ;;  %v685_v32 = vand.u32 2147483647, %v1408_v49  ;;  %v677_v19 = vmax.f32 %v1408_v49, 0.0 }
 0x2da   :  { %998 = vpow2.f32 %v698_v17  ;;  %v704_v48 = vmul.f32 1.442695, %v691_v40 }
 0x2db   :  { %1000 = vpow2.f32 %v694_v35  ;;  %v706_v30 = vmul.f32 1.442695, %v692_v58  ;;  %v693_v41 = vsub.f32 0.0, %v685_v32 }
 0x2dc   :  { %1002 = vpow2.f32 %v704_v48 }
 0x2dd   :  { %1004 = vpow2.f32 %v706_v30  ;;  %v708_v47 = vmul.f32 1.442695, %v693_v41 }
 0x2df   :  { %1006 = vpow2.f32 %v708_v47 }
 0x2e0   :  { %v1411_v60 = vpop.eup %992 }
 0x2e1   :  { %v719_v20 = vadd.f32 1.0, %v1411_v60  ;;  %v722_v13 = vmul.f32 -0.5, %v1411_v60  ;;  %v725_v33 = vand.u32 2147483647, %v1411_v60 }
 0x2e3   :  { %1008 = vlog2.f32 %v719_v20  ;;  %v723_v34 = vadd.f32 1.0, %v722_v13  ;;  %vm726_vm8 = vcmp.lt.f32.partialorder %v725_v33, 0.0004427343 }
 0x2e4   :  { %v1413_v61 = vpop.eup %994 }
 0x2e5   :  { %v737_v62 = vadd.f32 1.0, %v1413_v61  ;;  %v740_v22 = vmul.f32 -0.5, %v1413_v61  ;;  %v743_v17 = vand.u32 2147483647, %v1413_v61 }
 0x2e6   :  { %v997_v55 = vpop.eup %996 }
 0x2e7   :  { %v1417_v59 = vpop.eup %998  ;;  %v746_v4 = vadd.f32 1.0, %v997_v55  ;;  %1010 = vlog2.f32 %v737_v62  ;;  %v749_v63 = vmul.f32 -0.5, %v997_v55  ;;  %v752_v27 = vand.u32 2147483647, %v997_v55 }
 0x2e8   :  { %v1419_v5 = vpop.eup %1000  ;;  %v728_v7 = vadd.f32 1.0, %v1417_v59  ;;  %v731_v53 = vmul.f32 -0.5, %v1417_v59  ;;  %v734_v43 = vand.u32 2147483647, %v1417_v59  ;;  %v741_v35 = vadd.f32 1.0, %v740_v22 }
 0x2e9   :  { %v1421_v56 = vpop.eup %1002  ;;  %1012 = vlog2.f32 %v746_v4  ;;  %v710_v52 = vadd.f32 1.0, %v1419_v5  ;;  %v713_v57 = vmul.f32 -0.5, %v1419_v5  ;;  %v716_v15 = vand.u32 2147483647, %v1419_v5 }
 0x2ea   :  { %v1005_v6 = vpop.eup %1004  ;;  %v755_v36 = vadd.f32 1.0, %v1421_v56  ;;  %v758_v9 = vmul.f32 -0.5, %v1421_v56  ;;  %v732_v12 = vadd.f32 1.0, %v731_v53  ;;  %v750_v28 = vadd.f32 1.0, %v749_v63 }
 0x2eb   :  { %v764_v37 = vadd.f32 1.0, %v1005_v6  ;;  %v767_v2 = vmul.f32 -0.5, %v1005_v6  ;;  %v714_v24 = vadd.f32 1.0, %v713_v57  ;;  %v770_v31 = vand.u32 2147483647, %v1005_v6 }
 0x2ec   :  { %v1007_v0 = vpop.eup %1006  ;;  %1014 = vlog2.f32 %v755_v36  ;;  %v759_v10 = vadd.f32 1.0, %v758_v9  ;;  %v761_v51 = vand.u32 2147483647, %v1421_v56  ;;  %v733_v49 = vmul.f32 %v1417_v59, %v732_v12 }
 0x2ed   :  { %1016 = vlog2.f32 %v764_v37  ;;  %v773_v1 = vadd.f32 1.0, %v1007_v0  ;;  %v776_v8 = vmul.f32 -0.5, %v1007_v0  ;;  %v768_v29 = vadd.f32 1.0, %v767_v2 }
 0x2ee   :  { %1018 = vlog2.f32 %v728_v7  ;;  %v779_v44 = vand.u32 2147483647, %v1007_v0  ;;  %vm1442_vm2 = vcmp.lt.f32.partialorder %v752_v27, 0.0004427343  ;;  %v751_v41 = vmul.f32 %v997_v55, %v750_v28 }
 0x2ef   :  { %1020 = vlog2.f32 %v773_v1  ;;  %v777_v45 = vadd.f32 1.0, %v776_v8  ;;  %v769_v47 = vmul.f32 %v1005_v6, %v768_v29  ;;  %vm1446_vm3 = vcmp.lt.f32.partialorder %v770_v31, 0.0004427343 }
 0x2f0   :  { %1022 = vlog2.f32 %v710_v52  ;;  %v1009_v16 = vpop.eup %1008  ;;  %v760_v36 = vmul.f32 %v1421_v56, %v759_v10  ;;  %vm780_vm4 = vcmp.lt.f32.partialorder %v779_v44, 0.0004427343  ;;  %vm1453_vm5 = vcmp.lt.f32.partialorder %v761_v51, 0.0004427343 }
 0x2f1   :  { %v778_v7 = vmul.f32 %v1007_v0, %v777_v45  ;;  %v742_v57 = vmul.f32 %v1413_v61, %v741_v35  ;;  %v721_v53 = vmul.f32 0.6931472, %v1009_v16  ;;  %vm1462_vm6 = vcmp.lt.f32.partialorder %v743_v17, 0.0004427343 }
 0x2f2   :  { %vm1466_vm7 = vcmp.lt.f32.partialorder %v734_v43, 0.0004427343  ;;  %v724_v61 = vmul.f32 %v1411_v60, %v723_v34  ;;  %v715_v16 = vmul.f32 %v1419_v5, %v714_v24  ;;  %vm717_vm9 = vcmp.lt.f32.partialorder %v716_v15, 0.0004427343 }
 0x2f3   :  { %v670_v5 = vmax.f32 %v1387_v11, 0.0  ;;  %v795_v11 = vpop.permute.xlu0 %794 }
 0x2f4   :  { %v1011_v23 = vpop.eup %1010 }
 0x2f5   :  { %v739_v59 = vmul.f32 0.6931472, %v1011_v23  ;;  %v672_v23 = vmax.f32 %v1392_v3, 0.0  ;;  %v790_v3 = vld [vmem:[%s1498_s7] sm:$0x1] }
 0x2f6   :  { %v1013_v21 = vpop.eup %1012 }
 0x2f7   :  { %v748_v30 = vmul.f32 0.6931472, %v1013_v21  ;;  %v745_v22 = vsel %vm1462_vm6, %v742_v57, %v739_v59  ;;  %v671_v21 = vmax.f32 %v1389_v14, 0.0  ;;  %v797_v14 = vlaneseq }
 0x2f8   :  { %v785_v60 = vadd.f32 %v745_v22, %v673_v54  ;;  %v879_v54 = vunpack.c.l.s4 %v1026_v25 }
 0x2f9   :  { %v1015_v38 = vpop.eup %1014  ;;  %v754_v56 = vsel %vm1442_vm2, %v751_v41, %v748_v30  ;;  %v798_v26 = vshrl.u32 %v797_v14, 7  ;;  %vm895_vm10 = vcmp.lt.s32.totalorder %v797_v14, 256 }
 0x2fa   :  { %v1017_v50 = vpop.eup %1016  ;;  %v757_v32 = vmul.f32 0.6931472, %v1015_v38  ;;  %v786_v12 = vadd.f32 %v754_v56, %v674_v46  ;;  %v880_v28 = vunpack.c.0.s8 %v879_v54 }
 0x2fb   :  { %v1019_v42 = vpop.eup %1018  ;;  %v766_v58 = vmul.f32 0.6931472, %v1017_v50  ;;  %v799_v46 = vsub.s32 0, %v798_v26 }
 0x2fc   :  { %v1021_v48 = vpop.eup %1020  ;;  %v730_v37 = vmul.f32 0.6931472, %v1019_v42  ;;  %v763_v6 = vsel %vm1453_vm5, %v760_v36, %v757_v32  ;;  %v883_v45 = vsub.s32 %v880_v28, %v798_v26 }
 0x2fd   :  { %v1023_v62 = vpop.eup %1022  ;;  %v775_v4 = vmul.f32 0.6931472, %v1021_v48  ;;  %v772_v52 = vsel %vm1446_vm3, %v769_v47, %v766_v58  ;;  %v800_v31 = vrot.slane %v795_v11, %v799_v46 }
 0x2fe   :  { %v712_v0 = vmul.f32 0.6931472, %v1023_v62  ;;  %v788_v9 = vadd.f32 %v772_v52, %v676_v18  ;;  %v736_v13 = vsel %vm1466_vm7, %v733_v49, %v730_v37  ;;  %v727_v18 = vsel %vm726_vm8, %v724_v61, %v721_v53 }
 0x2ff   :  { %v781_v55 = vsel %vm780_vm4, %v778_v7, %v775_v4  ;;  %v784_v24 = vadd.f32 %v736_v13, %v672_v23 }
 0x300   :  { %v789_v63 = vadd.f32 %v781_v55, %v677_v19  ;;  %v787_v19 = vadd.f32 %v763_v6, %v675_v39  ;;  %v718_v27 = vsel %vm717_vm9, %v715_v16, %v712_v0  ;;  %v783_v39 = vadd.f32 %v727_v18, %v671_v21 }
 0x301   :  { %v782_v15 = vadd.f32 %v718_v27, %v670_v5 }
 0x302   :  { %828 = vmatprep.subr.mxu1 %v789_v63 }
 0x303   :  { %829 = vmatpush1.msra.mxu1 %v788_v9 }
 0x304   :  { %830 = vmatprep.subr.mxu1 %v787_v19 }
 0x305   :  { %831 = vmatpush1.msra.mxu1 %v786_v12 }
 0x306   :  { %832 = vmatprep.subr.mxu1 %v785_v60 }
 0x307   :  { %833 = vmatpush1.msra.mxu1 %v784_v24 }
 0x308   :  { %834 = vmatprep.subr.mxu1 %v783_v39 }
 0x309   :  { %835 = vmatpush1.msra.mxu1 %v782_v15 }
 0x30a   :  { %914 = vmatmul.mubr.msk.f32.vlgmr.msra.gmra.mxu1 %vm70_vm0, %v790_v3 }
 0x3ca   :  { %v870_v29 = vpop.f32.mrf.mxu1 }
 0x3cb   :  { %v871_v38 = vadd.f32 %v870_v29, %v800_v31 }
 0x3cc   :  { %v872_v33 = vpop.f32.mrf.mxu1 }
 0x3cd   :  { %v873_v43 = vadd.f32 %v872_v33, %v800_v31 }
 0x3cf   :  { %v877_v10 = vcombine.low %v871_v38, %v873_v43 }
 0x3d1   :  { %v884_v17 = vrot.slane %v877_v10, %v883_v45 }
 0x3d3   :  { %v891_v50 = vrot.slane %v884_v17, %v883_v45 }
 0x3d5   :  { %897 = vst.msk [vmem:[%s1499_s9] sm:$0x3] %vm895_vm10, %v891_v50 }

</bundles_post_ra>
